<compile_context>
chip_gen: v7x
topology: tpu7x:2x2x1
jax: 0.10.0
libtpu: 0.0.40
codegen_flags: <defaults>
</compile_context>

<pallas_src>
import jax
import jax.numpy as jnp
from jax.experimental import pallas as pl
from jax.experimental.pallas import tpu as pltpu

_EPS = 1e-5  # torch.nn.LayerNorm default eps


def residual_block_kernel(x_ref, w1_ref, b1_ref, g_ref, be_ref, w2_ref, b2_ref, o_ref):
    # Linear 1: x @ W1 + b1   (MXU, bf16 operands, f32 accumulate)
    h = jnp.dot(x_ref[...].astype(jnp.bfloat16), w1_ref[...],
                preferred_element_type=jnp.float32) + b1_ref[...]

    # LayerNorm over last dim: single-pass stats (sum & sum-of-squares), biased
    # variance clamped at 0 (cancellation guard), eps inside rsqrt (torch semantics).
    inv_d = 1.0 / h.shape[-1]
    s = jnp.sum(h, axis=-1, keepdims=True)
    ss = jnp.sum(h * h, axis=-1, keepdims=True)
    mean = s * inv_d
    var = jnp.maximum(ss * inv_d - mean * mean, 0.0)
    hn = (h - mean) * jax.lax.rsqrt(var + _EPS)
    hn = hn * g_ref[...] + be_ref[...]

    # ReLU (VPU, f32)
    hn = jnp.maximum(hn, 0.0)

    # Dropout(p=0.1): identity in eval mode.
    # TODO(synk): training-mode dropout would use pltpu.prng_seed + pltpu.prng_random_bits.

    # Linear 2: hn @ W2 + b2   (MXU, bf16 operands, f32 accumulate)
    y = jnp.dot(hn.astype(jnp.bfloat16), w2_ref[...],
                preferred_element_type=jnp.float32) + b2_ref[...]

    # Residual add: re-read the VMEM-resident x tile only here (short f32 live range).
    o_ref[...] = (x_ref[...].astype(jnp.float32) + y).astype(o_ref.dtype)


def prepare_params(w1, b1, gamma, beta, w2, b2):
    """One-time parameter prep (NOT per call): transpose PyTorch (out, in) Linear
    weights to (in, out) and cast to bf16 for the MXU; biases/affine params stay
    f32 as [1, D] rows for clean lane broadcast."""
    D = w1.shape[0]
    return dict(
        w1=jnp.transpose(w1).astype(jnp.bfloat16),
        w2=jnp.transpose(w2).astype(jnp.bfloat16),
        b1=b1.reshape(1, D).astype(jnp.float32),
        b2=b2.reshape(1, D).astype(jnp.float32),
        gamma=gamma.reshape(1, D).astype(jnp.float32),
        beta=beta.reshape(1, D).astype(jnp.float32),
    )


def _round_up(n, m):
    return ((n + m - 1) // m) * m


def _vmem_capacity_bytes():
    try:
        return int(pltpu.get_tpu_info().vmem_capacity_bytes)
    except Exception:
        return 64 << 20  # conservative: v7x per-TC physical VMEM


def residual_block(x, params, *, tb=None):
    """x: [B, D] f32; params from prepare_params()."""
    B, D = x.shape

    # Batch tile: larger for small D (mem-bound regime, amortize per-step overhead),
    # multiple of 16 (bf16 sublane packing) but never beyond the (8-rounded) batch.
    if tb is None:
        tb = 512 if D <= 512 else 256
    tb = _round_up(max(int(tb), 8), 8)
    TB = min(tb, _round_up(B, 16))
    TB = min(TB, _round_up(B, 8))
    grid = (pl.cdiv(B, TB),)  # partial last block is masked; op is purely row-wise.

    itemsize = jnp.dtype(x.dtype).itemsize
    weight_bytes = 2 * D * D * 2                 # W1 + W2, bf16, one copy each
    vec_bytes = 4 * D * 4                        # b1, b2, gamma, beta (f32 rows)
    stream_bytes = 2 * TB * D * itemsize + 2 * TB * D * itemsize   # x & out, 2 bufs each
    # Budget weights at 2x so the no-Buffered(1) fallback path still compiles; the
    # limit is a ceiling, not a reservation.
    budget = 2 * weight_bytes + 2 * vec_bytes + stream_bytes + (4 << 20)
    cap = (_vmem_capacity_bytes() * 3) // 4
    vmem_limit = int(max(16 << 20, min(budget, cap)))
    # TODO(synk): for D large enough that the bf16 weights can't stay resident under
    # `cap` (roughly D >= 2048 on v7x), stream W1/W2 in column blocks with an inner
    # pltpu.emit_pipeline and a (TB, D) f32 h-scratch instead of resident weights.

    cost = pl.CostEstimate(
        flops=4 * B * D * D,                     # two D x D matmuls per row
        transcendentals=B,                       # one rsqrt per row
        bytes_accessed=2 * B * D * itemsize + weight_bytes + vec_bytes,
    )

    def _build_and_call(single_buffer_weights):
        resident_kwargs = (
            dict(pipeline_mode=pl.Buffered(1)) if single_buffer_weights else {}
        )
        x_spec = pl.BlockSpec((TB, D), lambda i: (i, 0))
        out_spec = pl.BlockSpec((TB, D), lambda i: (i, 0))
        # Grid-invariant params: single-buffer (no point double-buffering constants).
        w_spec = pl.BlockSpec((D, D), lambda i: (0, 0), **resident_kwargs)
        v_spec = pl.BlockSpec((1, D), lambda i: (0, 0), **resident_kwargs)
        return pl.pallas_call(
            residual_block_kernel,
            out_shape=jax.ShapeDtypeStruct((B, D), x.dtype),
            grid=grid,
            in_specs=[x_spec, w_spec, v_spec, v_spec, v_spec, w_spec, v_spec],
            out_specs=out_spec,
            compiler_params=pltpu.CompilerParams(
                dimension_semantics=("parallel",),   # dual-TC sharding on v7x
                vmem_limit_bytes=vmem_limit,
            ),
            cost_estimate=cost,
        )(x, params["w1"], params["b1"], params["gamma"], params["beta"],
          params["w2"], params["b2"])

    try:
        return _build_and_call(True)
    except Exception:
        # Older jax without BlockSpec pipeline_mode / pl.Buffered, or lowering
        # rejection: fall back to default (double-buffered) resident params.
        return _build_and_call(False)


def _reference(x, w1, b1, gamma, beta, w2, b2):
    h = x @ w1.T + b1
    mean = jnp.mean(h, axis=-1, keepdims=True)
    var = jnp.mean((h - mean) ** 2, axis=-1, keepdims=True)
    hn = (h - mean) / jnp.sqrt(var + _EPS) * gamma + beta
    hn = jnp.maximum(hn, 0.0)
    return x + (hn @ w2.T + b2)


def _make_params(key, D):
    kw1, kb1, kw2, kb2 = jax.random.split(key, 4)
    bound = 1.0 / (D ** 0.5)
    w1 = jax.random.uniform(kw1, (D, D), jnp.float32, -bound, bound)
    b1 = jax.random.uniform(kb1, (D,), jnp.float32, -bound, bound)
    w2 = jax.random.uniform(kw2, (D, D), jnp.float32, -bound, bound)
    b2 = jax.random.uniform(kb2, (D,), jnp.float32, -bound, bound)
    gamma = jnp.ones((D,), jnp.float32)
    beta = jnp.zeros((D,), jnp.float32)
    return w1, b1, gamma, beta, w2, b2


if __name__ == "__main__":
    key = jax.random.PRNGKey(0)
    kx1, kx2, kp = jax.random.split(key, 3)

    D = 128
    w1, b1, gamma, beta, w2, b2 = _make_params(kp, D)
    params = prepare_params(w1, b1, gamma, beta, w2, b2)   # one-time prep, not per call

    # Test 1: small batch (single grid point, full-extent tile).
    B = 8
    x = jax.random.normal(kx1, (B, D), dtype=jnp.float32)
    out = jax.block_until_ready(residual_block(x, params))
    ref = _reference(x, w1, b1, gamma, beta, w2, b2)
    assert out.shape == (B, D) and out.dtype == x.dtype
    # bf16 MXU operands vs pure-f32 reference -> loosened tolerance (documented).
    assert jnp.allclose(out, ref, atol=5e-2, rtol=5e-2), float(jnp.max(jnp.abs(out - ref)))

    # Test 2: multi-step grid with a masked partial last block (no jnp.pad round-trip),
    # exercising the resident single-buffered weights across batch tiles.
    B2 = 40
    x2 = jax.random.normal(kx2, (B2, D), dtype=jnp.float32)
    out2 = jax.block_until_ready(residual_block(x2, params, tb=16))
    ref2 = _reference(x2, w1, b1, gamma, beta, w2, b2)
    assert out2.shape == (B2, D) and out2.dtype == x2.dtype
    assert jnp.allclose(out2, ref2, atol=5e-2, rtol=5e-2), float(jnp.max(jnp.abs(out2 - ref2)))

    print("KERNEL_OK")
</pallas_src>

<mosaic_0001>
module attributes {stable_mosaic.version = 11 : i64} {
  func.func @residual_block_kernel(%arg0: i32, %arg1: memref<8x128xf32, #tpu.memory_space<vmem>>, %arg2: memref<128x128xbf16, #tpu.memory_space<vmem>>, %arg3: memref<1x128xf32, #tpu.memory_space<vmem>>, %arg4: memref<1x128xf32, #tpu.memory_space<vmem>>, %arg5: memref<1x128xf32, #tpu.memory_space<vmem>>, %arg6: memref<128x128xbf16, #tpu.memory_space<vmem>>, %arg7: memref<1x128xf32, #tpu.memory_space<vmem>>, %arg8: memref<8x128xf32, #tpu.memory_space<vmem>>) attributes {dimension_semantics = [#tpu.dimension_semantics<parallel>], iteration_bounds = array<i64: 1>, scalar_prefetch = 0 : i64, scratch_operands = 0 : i64, tpu.core_type = #tpu.core_type<tc>, window_params = [{transform_indices = @transform_0, window_bounds = array<i64: 8, 128>}, {pipeline_mode = #tpu.pipeline_mode<synchronous>, transform_indices = @transform_1, window_bounds = array<i64: 128, 128>}, {pipeline_mode = #tpu.pipeline_mode<synchronous>, transform_indices = @transform_2, window_bounds = array<i64: 1, 128>}, {pipeline_mode = #tpu.pipeline_mode<synchronous>, transform_indices = @transform_3, window_bounds = array<i64: 1, 128>}, {pipeline_mode = #tpu.pipeline_mode<synchronous>, transform_indices = @transform_4, window_bounds = array<i64: 1, 128>}, {pipeline_mode = #tpu.pipeline_mode<synchronous>, transform_indices = @transform_5, window_bounds = array<i64: 128, 128>}, {pipeline_mode = #tpu.pipeline_mode<synchronous>, transform_indices = @transform_6, window_bounds = array<i64: 1, 128>}, {transform_indices = @transform_7, window_bounds = array<i64: 8, 128>}]} {
    %c0 = arith.constant 0 : index
    %c0_0 = arith.constant 0 : index
    %0 = vector.load %arg1[%c0, %c0_0] : memref<8x128xf32, #tpu.memory_space<vmem>>, vector<8x128xf32>
    %1 = arith.truncf %0 : vector<8x128xf32> to vector<8x128xbf16>
    %c0_1 = arith.constant 0 : index
    %c0_2 = arith.constant 0 : index
    %2 = vector.load %arg2[%c0_1, %c0_2] : memref<128x128xbf16, #tpu.memory_space<vmem>>, vector<128x128xbf16>
    %cst = arith.constant dense<0.000000e+00> : vector<8x128xf32>
    %3 = tpu.matmul %1, %2, %cst {dimension_numbers = #tpu.dot_dimension_numbers<[1], [0], [0], [1], [0, 0, 1, 1], [], []>} : vector<8x128xbf16>, vector<128x128xbf16>, vector<8x128xf32> -> vector<8x128xf32>
    %c0_3 = arith.constant 0 : index
    %c0_4 = arith.constant 0 : index
    %4 = vector.load %arg3[%c0_3, %c0_4] : memref<1x128xf32, #tpu.memory_space<vmem>>, vector<1x128xf32>
    %5 = vector.broadcast %4 : vector<1x128xf32> to vector<8x128xf32>
    %6 = arith.addf %3, %5 : vector<8x128xf32>
    %cst_5 = arith.constant dense<0.000000e+00> : vector<8xf32>
    %7 = vector.multi_reduction <add>, %6, %cst_5 [1] : vector<8x128xf32> to vector<8xf32>
    %8 = vector.shape_cast %7 : vector<8xf32> to vector<8x1xf32>
    %9 = arith.mulf %6, %6 : vector<8x128xf32>
    %cst_6 = arith.constant dense<0.000000e+00> : vector<8xf32>
    %10 = vector.multi_reduction <add>, %9, %cst_6 [1] : vector<8x128xf32> to vector<8xf32>
    %11 = vector.shape_cast %10 : vector<8xf32> to vector<8x1xf32>
    %cst_7 = arith.constant 7.812500e-03 : f32
    %12 = vector.broadcast %cst_7 : f32 to vector<8x1xf32>
    %13 = arith.mulf %8, %12 : vector<8x1xf32>
    %cst_8 = arith.constant 7.812500e-03 : f32
    %14 = vector.broadcast %cst_8 : f32 to vector<8x1xf32>
    %15 = arith.mulf %11, %14 : vector<8x1xf32>
    %16 = arith.mulf %13, %13 : vector<8x1xf32>
    %17 = arith.subf %15, %16 : vector<8x1xf32>
    %cst_9 = arith.constant 0.000000e+00 : f32
    %18 = vector.broadcast %cst_9 : f32 to vector<8x1xf32>
    %19 = arith.maximumf %17, %18 : vector<8x1xf32>
    %20 = vector.broadcast %13 : vector<8x1xf32> to vector<8x128xf32>
    %21 = arith.subf %6, %20 : vector<8x128xf32>
    %cst_10 = arith.constant 9.99999974E-6 : f32
    %22 = vector.broadcast %cst_10 : f32 to vector<8x1xf32>
    %23 = arith.addf %19, %22 : vector<8x1xf32>
    %24 = math.rsqrt %23 : vector<8x1xf32>
    %25 = vector.broadcast %24 : vector<8x1xf32> to vector<8x128xf32>
    %26 = arith.mulf %21, %25 : vector<8x128xf32>
    %c0_11 = arith.constant 0 : index
    %c0_12 = arith.constant 0 : index
    %27 = vector.load %arg4[%c0_11, %c0_12] : memref<1x128xf32, #tpu.memory_space<vmem>>, vector<1x128xf32>
    %28 = vector.broadcast %27 : vector<1x128xf32> to vector<8x128xf32>
    %29 = arith.mulf %26, %28 : vector<8x128xf32>
    %c0_13 = arith.constant 0 : index
    %c0_14 = arith.constant 0 : index
    %30 = vector.load %arg5[%c0_13, %c0_14] : memref<1x128xf32, #tpu.memory_space<vmem>>, vector<1x128xf32>
    %31 = vector.broadcast %30 : vector<1x128xf32> to vector<8x128xf32>
    %32 = arith.addf %29, %31 : vector<8x128xf32>
    %cst_15 = arith.constant 0.000000e+00 : f32
    %33 = vector.broadcast %cst_15 : f32 to vector<8x128xf32>
    %34 = arith.maximumf %32, %33 : vector<8x128xf32>
    %35 = arith.truncf %34 : vector<8x128xf32> to vector<8x128xbf16>
    %c0_16 = arith.constant 0 : index
    %c0_17 = arith.constant 0 : index
    %36 = vector.load %arg6[%c0_16, %c0_17] : memref<128x128xbf16, #tpu.memory_space<vmem>>, vector<128x128xbf16>
    %cst_18 = arith.constant dense<0.000000e+00> : vector<8x128xf32>
    %37 = tpu.matmul %35, %36, %cst_18 {dimension_numbers = #tpu.dot_dimension_numbers<[1], [0], [0], [1], [0, 0, 1, 1], [], []>} : vector<8x128xbf16>, vector<128x128xbf16>, vector<8x128xf32> -> vector<8x128xf32>
    %c0_19 = arith.constant 0 : index
    %c0_20 = arith.constant 0 : index
    %38 = vector.load %arg7[%c0_19, %c0_20] : memref<1x128xf32, #tpu.memory_space<vmem>>, vector<1x128xf32>
    %39 = vector.broadcast %38 : vector<1x128xf32> to vector<8x128xf32>
    %40 = arith.addf %37, %39 : vector<8x128xf32>
    %c0_21 = arith.constant 0 : index
    %c0_22 = arith.constant 0 : index
    %41 = vector.load %arg1[%c0_21, %c0_22] : memref<8x128xf32, #tpu.memory_space<vmem>>, vector<8x128xf32>
    %42 = arith.addf %41, %40 : vector<8x128xf32>
    %c0_23 = arith.constant 0 : index
    %c0_24 = arith.constant 0 : index
    %43 = vector.load %arg8[%c0_23, %c0_24] : memref<8x128xf32, #tpu.memory_space<vmem>>, vector<8x128xf32>
    tpu.vector_store %arg8[%c0_23, %c0_24], %42 {strides = array<i32>} : memref<8x128xf32, #tpu.memory_space<vmem>>, vector<8x128xf32>,
    return
  }
  func.func @transform_0(%arg0: i32) -> (i32, i32) {
    %c0_i32 = arith.constant 0 : i32
    %c0_i32_0 = arith.constant 0 : i32
    return %arg0, %c0_i32 : i32, i32
  }
  func.func @transform_1(%arg0: i32) -> (i32, i32) {
    %c0_i32 = arith.constant 0 : i32
    %c0_i32_0 = arith.constant 0 : i32
    %c0_i32_1 = arith.constant 0 : i32
    return %c0_i32, %c0_i32_0 : i32, i32
  }
  func.func @transform_2(%arg0: i32) -> (i32, i32) {
    %c0_i32 = arith.constant 0 : i32
    %c0_i32_0 = arith.constant 0 : i32
    %c0_i32_1 = arith.constant 0 : i32
    return %c0_i32, %c0_i32_0 : i32, i32
  }
  func.func @transform_3(%arg0: i32) -> (i32, i32) {
    %c0_i32 = arith.constant 0 : i32
    %c0_i32_0 = arith.constant 0 : i32
    %c0_i32_1 = arith.constant 0 : i32
    return %c0_i32, %c0_i32_0 : i32, i32
  }
  func.func @transform_4(%arg0: i32) -> (i32, i32) {
    %c0_i32 = arith.constant 0 : i32
    %c0_i32_0 = arith.constant 0 : i32
    %c0_i32_1 = arith.constant 0 : i32
    return %c0_i32, %c0_i32_0 : i32, i32
  }
  func.func @transform_5(%arg0: i32) -> (i32, i32) {
    %c0_i32 = arith.constant 0 : i32
    %c0_i32_0 = arith.constant 0 : i32
    %c0_i32_1 = arith.constant 0 : i32
    return %c0_i32, %c0_i32_0 : i32, i32
  }
  func.func @transform_6(%arg0: i32) -> (i32, i32) {
    %c0_i32 = arith.constant 0 : i32
    %c0_i32_0 = arith.constant 0 : i32
    %c0_i32_1 = arith.constant 0 : i32
    return %c0_i32, %c0_i32_0 : i32, i32
  }
  func.func @transform_7(%arg0: i32) -> (i32, i32) {
    %c0_i32 = arith.constant 0 : i32
    %c0_i32_0 = arith.constant 0 : i32
    return %arg0, %c0_i32 : i32, i32
  }
}

module attributes {stable_mosaic.version = 11 : i64} {
  func.func @residual_block_kernel(%arg0: i32, %arg1: memref<8x128xf32, #tpu.memory_space<vmem>>, %arg2: memref<128x128xbf16, #tpu.memory_space<vmem>>, %arg3: memref<1x128xf32, #tpu.memory_space<vmem>>, %arg4: memref<1x128xf32, #tpu.memory_space<vmem>>, %arg5: memref<1x128xf32, #tpu.memory_space<vmem>>, %arg6: memref<128x128xbf16, #tpu.memory_space<vmem>>, %arg7: memref<1x128xf32, #tpu.memory_space<vmem>>, %arg8: memref<8x128xf32, #tpu.memory_space<vmem>>) attributes {dimension_semantics = [#tpu.dimension_semantics<parallel>], iteration_bounds = array<i64: 1>, scalar_prefetch = 0 : i64, scratch_operands = 0 : i64, tpu.core_type = #tpu.core_type<tc>, window_params = [{transform_indices = @transform_0, window_bounds = array<i64: 8, 128>}, {pipeline_mode = #tpu.pipeline_mode<synchronous>, transform_indices = @transform_1, window_bounds = array<i64: 128, 128>}, {pipeline_mode = #tpu.pipeline_mode<synchronous>, transform_indices = @transform_2, window_bounds = array<i64: 1, 128>}, {pipeline_mode = #tpu.pipeline_mode<synchronous>, transform_indices = @transform_3, window_bounds = array<i64: 1, 128>}, {pipeline_mode = #tpu.pipeline_mode<synchronous>, transform_indices = @transform_4, window_bounds = array<i64: 1, 128>}, {pipeline_mode = #tpu.pipeline_mode<synchronous>, transform_indices = @transform_5, window_bounds = array<i64: 128, 128>}, {pipeline_mode = #tpu.pipeline_mode<synchronous>, transform_indices = @transform_6, window_bounds = array<i64: 1, 128>}, {transform_indices = @transform_7, window_bounds = array<i64: 8, 128>}]} {
    %c0 = arith.constant 0 : index
    %c0_0 = arith.constant 0 : index
    %0 = vector.load %arg1[%c0, %c0_0] : memref<8x128xf32, #tpu.memory_space<vmem>>, vector<8x128xf32>
    %1 = arith.truncf %0 : vector<8x128xf32> to vector<8x128xbf16>
    %c0_1 = arith.constant 0 : index
    %c0_2 = arith.constant 0 : index
    %2 = vector.load %arg2[%c0_1, %c0_2] : memref<128x128xbf16, #tpu.memory_space<vmem>>, vector<128x128xbf16>
    %cst = arith.constant dense<0.000000e+00> : vector<8x128xf32>
    %3 = tpu.matmul %1, %2, %cst {dimension_numbers = #tpu.dot_dimension_numbers<[1], [0], [0], [1], [0, 0, 1, 1], [], []>} : vector<8x128xbf16>, vector<128x128xbf16>, vector<8x128xf32> -> vector<8x128xf32>
    %c0_3 = arith.constant 0 : index
    %c0_4 = arith.constant 0 : index
    %4 = vector.load %arg3[%c0_3, %c0_4] : memref<1x128xf32, #tpu.memory_space<vmem>>, vector<1x128xf32>
    %5 = vector.broadcast %4 : vector<1x128xf32> to vector<8x128xf32>
    %6 = arith.addf %3, %5 : vector<8x128xf32>
    %cst_5 = arith.constant dense<0.000000e+00> : vector<8xf32>
    %7 = vector.multi_reduction <add>, %6, %cst_5 [1] : vector<8x128xf32> to vector<8xf32>
    %8 = vector.shape_cast %7 : vector<8xf32> to vector<8x1xf32>
    %9 = arith.mulf %6, %6 : vector<8x128xf32>
    %cst_6 = arith.constant dense<0.000000e+00> : vector<8xf32>
    %10 = vector.multi_reduction <add>, %9, %cst_6 [1] : vector<8x128xf32> to vector<8xf32>
    %11 = vector.shape_cast %10 : vector<8xf32> to vector<8x1xf32>
    %cst_7 = arith.constant 7.812500e-03 : f32
    %12 = vector.broadcast %cst_7 : f32 to vector<8x1xf32>
    %13 = arith.mulf %8, %12 : vector<8x1xf32>
    %cst_8 = arith.constant 7.812500e-03 : f32
    %14 = vector.broadcast %cst_8 : f32 to vector<8x1xf32>
    %15 = arith.mulf %11, %14 : vector<8x1xf32>
    %16 = arith.mulf %13, %13 : vector<8x1xf32>
    %17 = arith.subf %15, %16 : vector<8x1xf32>
    %cst_9 = arith.constant 0.000000e+00 : f32
    %18 = vector.broadcast %cst_9 : f32 to vector<8x1xf32>
    %19 = arith.maximumf %17, %18 : vector<8x1xf32>
    %20 = vector.broadcast %13 : vector<8x1xf32> to vector<8x128xf32>
    %21 = arith.subf %6, %20 : vector<8x128xf32>
    %cst_10 = arith.constant 9.99999974E-6 : f32
    %22 = vector.broadcast %cst_10 : f32 to vector<8x1xf32>
    %23 = arith.addf %19, %22 : vector<8x1xf32>
    %24 = math.rsqrt %23 : vector<8x1xf32>
    %25 = vector.broadcast %24 : vector<8x1xf32> to vector<8x128xf32>
    %26 = arith.mulf %21, %25 : vector<8x128xf32>
    %c0_11 = arith.constant 0 : index
    %c0_12 = arith.constant 0 : index
    %27 = vector.load %arg4[%c0_11, %c0_12] : memref<1x128xf32, #tpu.memory_space<vmem>>, vector<1x128xf32>
    %28 = vector.broadcast %27 : vector<1x128xf32> to vector<8x128xf32>
    %29 = arith.mulf %26, %28 : vector<8x128xf32>
    %c0_13 = arith.constant 0 : index
    %c0_14 = arith.constant 0 : index
    %30 = vector.load %arg5[%c0_13, %c0_14] : memref<1x128xf32, #tpu.memory_space<vmem>>, vector<1x128xf32>
    %31 = vector.broadcast %30 : vector<1x128xf32> to vector<8x128xf32>
    %32 = arith.addf %29, %31 : vector<8x128xf32>
    %cst_15 = arith.constant 0.000000e+00 : f32
    %33 = vector.broadcast %cst_15 : f32 to vector<8x128xf32>
    %34 = arith.maximumf %32, %33 : vector<8x128xf32>
    %35 = arith.truncf %34 : vector<8x128xf32> to vector<8x128xbf16>
    %c0_16 = arith.constant 0 : index
    %c0_17 = arith.constant 0 : index
    %36 = vector.load %arg6[%c0_16, %c0_17] : memref<128x128xbf16, #tpu.memory_space<vmem>>, vector<128x128xbf16>
    %cst_18 = arith.constant dense<0.000000e+00> : vector<8x128xf32>
    %37 = tpu.matmul %35, %36, %cst_18 {dimension_numbers = #tpu.dot_dimension_numbers<[1], [0], [0], [1], [0, 0, 1, 1], [], []>} : vector<8x128xbf16>, vector<128x128xbf16>, vector<8x128xf32> -> vector<8x128xf32>
    %c0_19 = arith.constant 0 : index
    %c0_20 = arith.constant 0 : index
    %38 = vector.load %arg7[%c0_19, %c0_20] : memref<1x128xf32, #tpu.memory_space<vmem>>, vector<1x128xf32>
    %39 = vector.broadcast %38 : vector<1x128xf32> to vector<8x128xf32>
    %40 = arith.addf %37, %39 : vector<8x128xf32>
    %c0_21 = arith.constant 0 : index
    %c0_22 = arith.constant 0 : index
    %41 = vector.load %arg1[%c0_21, %c0_22] : memref<8x128xf32, #tpu.memory_space<vmem>>, vector<8x128xf32>
    %42 = arith.addf %41, %40 : vector<8x128xf32>
    %c0_23 = arith.constant 0 : index
    %c0_24 = arith.constant 0 : index
    %43 = vector.load %arg8[%c0_23, %c0_24] : memref<8x128xf32, #tpu.memory_space<vmem>>, vector<8x128xf32>
    tpu.vector_store %arg8[%c0_23, %c0_24], %42 {strides = array<i32>} : memref<8x128xf32, #tpu.memory_space<vmem>>, vector<8x128xf32>,
    return
  }
  func.func @transform_0(%arg0: i32) -> (i32, i32) {
    %c0_i32 = arith.constant 0 : i32
    %c0_i32_0 = arith.constant 0 : i32
    return %arg0, %c0_i32 : i32, i32
  }
  func.func @transform_1(%arg0: i32) -> (i32, i32) {
    %c0_i32 = arith.constant 0 : i32
    %c0_i32_0 = arith.constant 0 : i32
    %c0_i32_1 = arith.constant 0 : i32
    return %c0_i32, %c0_i32_0 : i32, i32
  }
  func.func @transform_2(%arg0: i32) -> (i32, i32) {
    %c0_i32 = arith.constant 0 : i32
    %c0_i32_0 = arith.constant 0 : i32
    %c0_i32_1 = arith.constant 0 : i32
    return %c0_i32, %c0_i32_0 : i32, i32
  }
  func.func @transform_3(%arg0: i32) -> (i32, i32) {
    %c0_i32 = arith.constant 0 : i32
    %c0_i32_0 = arith.constant 0 : i32
    %c0_i32_1 = arith.constant 0 : i32
    return %c0_i32, %c0_i32_0 : i32, i32
  }
  func.func @transform_4(%arg0: i32) -> (i32, i32) {
    %c0_i32 = arith.constant 0 : i32
    %c0_i32_0 = arith.constant 0 : i32
    %c0_i32_1 = arith.constant 0 : i32
    return %c0_i32, %c0_i32_0 : i32, i32
  }
  func.func @transform_5(%arg0: i32) -> (i32, i32) {
    %c0_i32 = arith.constant 0 : i32
    %c0_i32_0 = arith.constant 0 : i32
    %c0_i32_1 = arith.constant 0 : i32
    return %c0_i32, %c0_i32_0 : i32, i32
  }
  func.func @transform_6(%arg0: i32) -> (i32, i32) {
    %c0_i32 = arith.constant 0 : i32
    %c0_i32_0 = arith.constant 0 : i32
    %c0_i32_1 = arith.constant 0 : i32
    return %c0_i32, %c0_i32_0 : i32, i32
  }
  func.func @transform_7(%arg0: i32) -> (i32, i32) {
    %c0_i32 = arith.constant 0 : i32
    %c0_i32_0 = arith.constant 0 : i32
    return %arg0, %c0_i32 : i32, i32
  }
}

</mosaic_0001>

<bundles_post_ra>
// kernel: tpu_custom_call.1
= control target key start
LH: loop header
LB: loop body
LE: loop exit
PB: predicated region body
PF: predicated region fallthrough
CT: control target
= control target key end

     0   :  { %12 = vsyncpa [#allocation3], 0  ;;  %s658_s0 = inlined_call_operand.hbm [shape: f32[8,128], index: 0, kind: input, shape index: {}]   ;;  %s659_s1 = inlined_call_operand.hbm [shape: bf16[128,128], index: 1, kind: input, shape index: {}]   ;;  %s660_s2 = inlined_call_operand.vmem [shape: f32[1,128], index: 2, kind: input, shape index: {}]   ;;  %s661_s3 = inlined_call_operand.vmem [shape: f32[1,128], index: 3, kind: input, shape index: {}]   ;;  %s662_s4 = inlined_call_operand.vmem [shape: f32[1,128], index: 4, kind: input, shape index: {}]   ;;  %s663_s5 = inlined_call_operand.hbm [shape: bf16[128,128], index: 5, kind: input, shape index: {}]   ;;  %s664_s6 = inlined_call_operand.vmem [shape: f32[1,128], index: 6, kind: input, shape index: {}]   ;;  %s665_s7 = inlined_call_operand.hbm [shape: f32[8,128], index: 7, kind: output, shape index: {}]  }
   0x1   :  { %13 = vsyncpa [#allocation6], 0 }
   0x2   :  { %14 = vsyncpa [#allocation4], 0  ;;  %s539_s24 = smov [#allocation5]   ;;  %s445_s28 = scalar_lea.hbm %s659_s1, 1024 }
   0x3   :  { %s30_s25 = sshll.u32 %s539_s24, 4  ;;  %p446_p0 = scmp.ne.s32.totalorder %s659_s1, %s445_s28  ;;  %s31_s25 = int_to_ptr.vmem [resolvable:$true] %s30_s25 }
   0x4   :  { %p449_p1 = scmp.lt.u32.totalorder %s445_s28, %s659_s1 }
   0x6   :  { %p451_p2 = pnand %p449_p1, %p446_p0 }
   0x8   :  { %454 = shalt.err (!%p451_p2)
}
   0x9   :  { %s455_s10 = scalar_lea.vmem %s31_s25, 1024  ;;  %p460_p4 = scmp.lt.s32.totalorder %s31_s25, %s31_s25 }
   0xa   :  { %p456_p3 = scmp.ne.s32.totalorder %s31_s25, %s455_s10  ;;  %p461_p5 = scmp.lt.s32.totalorder %s455_s10, %s455_s10 }
   0xc   :  { %p462_p6 = por %p461_p5, %p460_p4 }
   0xe   :  { %p463_p7 = pnand %p462_p6, %p456_p3 }
  0x10   :  { %466 = shalt.err (!%p463_p7)
}
  0x11   :  { %s540_s11 = smov 64   ;;  %s541_s12 = smov 4  }
  0x12   :  { %36 = dma.hbm_to_vmem [thread:$0]  %s659_s1, 1024, %s31_s25, [#allocation6], %s540_s11, %s540_s11, %s541_s12  }
  0x13   :  { %s542_s15 = smov [#allocation2]   ;;  %s543_s17 = smov [#allocation7]  }
  0x14   :  { %s21_s16 = sshll.u32 %s542_s15, 4  ;;  %s48_s18 = sshll.u32 %s543_s17, 4  ;;  %s22_s16 = int_to_ptr.vmem [resolvable:$true] %s21_s16  ;;  %s49_s18 = int_to_ptr.vmem [resolvable:$true] %s48_s18 }
  0x15   :  { %s467_s21 = scalar_lea.hbm %s658_s0, 128 }
  0x16   :  { %p468_p8 = scmp.ne.s32.totalorder %s658_s0, %s467_s21  ;;  %p471_p9 = scmp.lt.u32.totalorder %s467_s21, %s658_s0 }
  0x18   :  { %p473_p10 = pnand %p471_p9, %p468_p8 }
  0x1a   :  { %476 = shalt.err (!%p473_p10)
}
  0x1b   :  { %s477_s1 = scalar_lea.vmem %s22_s16, 128  ;;  %p482_p12 = scmp.lt.s32.totalorder %s22_s16, %s22_s16 }
  0x1c   :  { %p478_p11 = scmp.ne.s32.totalorder %s22_s16, %s477_s1  ;;  %p483_p13 = scmp.lt.s32.totalorder %s477_s1, %s477_s1 }
  0x1e   :  { %p484_p0 = por %p483_p13, %p482_p12 }
  0x20   :  { %p485_p1 = pnand %p484_p0, %p478_p11 }
  0x22   :  { %488 = shalt.err (!%p485_p1)
}
  0x23   :  { %24 = dma.hbm_to_vmem [thread:$0]  %s658_s0, 128, %s22_s16, [#allocation3]  }
  0x24   :  { %s489_s30 = scalar_lea.hbm %s663_s5, 1024 }
  0x25   :  { %p490_p2 = scmp.ne.s32.totalorder %s663_s5, %s489_s30  ;;  %p493_p3 = scmp.lt.u32.totalorder %s489_s30, %s663_s5 }
  0x27   :  { %p495_p4 = pnand %p493_p3, %p490_p2 }
  0x29   :  { %498 = shalt.err (!%p495_p4)
}
  0x2a   :  { %s499_s14 = scalar_lea.vmem %s49_s18, 1024  ;;  %p504_p6 = scmp.lt.s32.totalorder %s49_s18, %s49_s18 }
  0x2b   :  { %p500_p5 = scmp.ne.s32.totalorder %s49_s18, %s499_s14  ;;  %p505_p7 = scmp.lt.s32.totalorder %s499_s14, %s499_s14 }
  0x2d   :  { %p506_p8 = por %p505_p7, %p504_p6 }
  0x2f   :  { %p507_p9 = pnand %p506_p8, %p500_p5 }
  0x31   :  { %510 = shalt.err (!%p507_p9)
}
  0x32   :  { %54 = dma.hbm_to_vmem [thread:$0]  %s663_s5, 1024, %s49_s18, [#allocation6], %s540_s11, %s540_s11, %s541_s12  }
  0x33   :  { %533 = dma.done.wait [#allocation3], 128  }
  0x34   :  { %534 = vsyncadd [#allocation3], 4294967168 }
  0x35   :  { %535 = dma.done.wait [#allocation6], 2048  }
  0x36   :  { %536 = vsyncadd [#allocation6], 4294965248  ;;  %v544_v0 = vmov 0.0   ;;  %vm545_vm0 = vmmov 0   ;;  %v427_v1 = vld [vmem:[#allocation5] sm:$0xff]   ;;  %v428_v2 = vld [vmem:[#allocation5 + $0x8] sm:$0xff]  }
  0x37   :  { %379 = vmatprep.subr.bf16.mxu0 %v544_v0  ;;  %395 = vmatprep.mubr.msk.bf16.mxu0 %vm545_vm0, %v544_v0  ;;  %v429_v3 = vld [vmem:[#allocation5 + $0x10] sm:$0xff]   ;;  %v430_v4 = vld [vmem:[#allocation5 + $0x18] sm:$0xff]   ;;  %v431_v5 = vld [vmem:[#allocation5 + $0x20] sm:$0xff]   ;;  %s546_s20 = smov [#allocation8]  }
  0x38   :  { %399 = vmatprep.subr.bf16.mxu1 %v544_v0  ;;  %415 = vmatprep.mubr.msk.bf16.mxu1 %vm545_vm0, %v544_v0  ;;  %v432_v6 = vld [vmem:[#allocation5 + $0x28] sm:$0xff]   ;;  %v433_v7 = vld [vmem:[#allocation5 + $0x30] sm:$0xff]   ;;  %v434_v8 = vld [vmem:[#allocation5 + $0x38] sm:$0xff]   ;;  %s331_s21 = sshll.u32 %s546_s20, 4  ;;  %s332_s21 = int_to_ptr.vmem [resolvable:$true] %s331_s21 }
  0x39   :  { %380 = vmatpush3.bf16.msra.mxu0 %v427_v1  ;;  %v629_v9 = vld [vmem:[#allocation2] sm:$0xff]  ;;  %v435_v18 = vld [vmem:[#allocation7] sm:$0xff]   ;;  %v436_v19 = vld [vmem:[#allocation7 + $0x8] sm:$0xff]   ;;  %p516_p11 = scmp.lt.s32.totalorder %s332_s21, %s332_s21 }
  0x3a   :  { %381 = vmatprep.subr.bf16.mxu0 %v544_v0  ;;  %v68_v10 = vpack.c.bf16 %v629_v9, %v629_v9  ;;  %v341_v11 = vld [vmem:[%s660_s2] ss:$0 sm:$0xff]  ;;  %400 = vmatpush3.bf16.msra.mxu1 %v435_v18  ;;  %v437_v20 = vld [vmem:[#allocation7 + $0x10] sm:$0xff]   ;;  %v439_v22 = vld [vmem:[#allocation7 + $0x20] sm:$0xff]  }
  0x3b   :  { %401 = vmatprep.subr.bf16.mxu1 %v544_v0  ;;  %v438_v21 = vld [vmem:[#allocation7 + $0x18] sm:$0xff]   ;;  %v440_v23 = vld [vmem:[#allocation7 + $0x28] sm:$0xff]   ;;  %v441_v24 = vld [vmem:[#allocation7 + $0x30] sm:$0xff]  }
  0x3c   :  { %v442_v25 = vld [vmem:[#allocation7 + $0x38] sm:$0xff]  }
  0x3d   :  { %382 = vmatpush3.bf16.msra.mxu0 %v428_v2  ;;  %v350_v36 = vld [vmem:[%s661_s3] ss:$0 sm:$0xff]  ;;  %s511_s3 = scalar_lea.vmem %s332_s21, 128 }
  0x3e   :  { %383 = vmatprep.subr.bf16.mxu0 %v544_v0  ;;  %402 = vmatpush3.bf16.msra.mxu1 %v436_v19  ;;  %v351_v38 = vld [vmem:[%s662_s4] ss:$0 sm:$0xff]  ;;  %p512_p10 = scmp.ne.s32.totalorder %s332_s21, %s511_s3  ;;  %p517_p12 = scmp.lt.s32.totalorder %s511_s3, %s511_s3 }
  0x3f   :  { %403 = vmatprep.subr.bf16.mxu1 %v544_v0  ;;  %v352_v43 = vld [vmem:[%s664_s6] ss:$0 sm:$0xff] }
  0x40   :  { %p518_p13 = por %p517_p12, %p516_p11 }
  0x41   :  { %384 = vmatpush3.bf16.msra.mxu0 %v429_v3 }
  0x42   :  { %385 = vmatprep.subr.bf16.mxu0 %v544_v0  ;;  %404 = vmatpush3.bf16.msra.mxu1 %v437_v20  ;;  %p519_p0 = pnand %p518_p13, %p512_p10 }
  0x43   :  { %405 = vmatprep.subr.bf16.mxu1 %v544_v0 }
  0x45   :  { %386 = vmatpush3.bf16.msra.mxu0 %v430_v4 }
  0x46   :  { %387 = vmatprep.subr.bf16.mxu0 %v544_v0  ;;  %406 = vmatpush3.bf16.msra.mxu1 %v438_v21 }
  0x47   :  { %407 = vmatprep.subr.bf16.mxu1 %v544_v0 }
  0x49   :  { %388 = vmatpush3.bf16.msra.mxu0 %v431_v5 }
  0x4a   :  { %389 = vmatprep.subr.bf16.mxu0 %v544_v0  ;;  %408 = vmatpush3.bf16.msra.mxu1 %v439_v22 }
  0x4b   :  { %409 = vmatprep.subr.bf16.mxu1 %v544_v0 }
  0x4d   :  { %390 = vmatpush3.bf16.msra.mxu0 %v432_v6 }
  0x4e   :  { %391 = vmatprep.subr.bf16.mxu0 %v544_v0  ;;  %410 = vmatpush3.bf16.msra.mxu1 %v440_v23 }
  0x4f   :  { %411 = vmatprep.subr.bf16.mxu1 %v544_v0 }
  0x51   :  { %392 = vmatpush3.bf16.msra.mxu0 %v433_v7 }
  0x52   :  { %393 = vmatprep.subr.bf16.mxu0 %v544_v0  ;;  %412 = vmatpush3.bf16.msra.mxu1 %v441_v24 }
  0x53   :  { %413 = vmatprep.subr.bf16.mxu1 %v544_v0 }
  0x55   :  { %394 = vmatpush3.bf16.msra.mxu0 %v434_v8 }
  0x56   :  { %414 = vmatpush3.bf16.msra.mxu1 %v442_v25 }
  0x58   :  { %396 = vmatmul.mubr.bf16.vlgmr.msra.gmra.mrb[0].mxu0 %v68_v10 }
 0x12b   :  { %v174_v12 = vpop.f32.mrb[0].mxu0 }
 0x12c   :  { %v175_v13 = vadd.f32 %v341_v11, %v174_v12  ;;  %v397_v14 = vpop.f32.mrb[1].mxu0 }
 0x12d   :  { %v177_v15 = vpop.f32.mrb[2].mxu0 }
 0x12e   :  { %180 = vadd.xlane.f32.xlu0 %v175_v13  ;;  %v398_v16 = vpop.f32.mrb[3].mxu0  ;;  %v182_v17 = vmul.f32 %v175_v13, %v175_v13 }
 0x132   :  { %183 = vadd.xlane.f32.xlu0 %v182_v17 }
 0x1bb   :  { %v181_v26 = vpop.xlane.xlu0 %180 }
 0x1bc   :  { %v185_v27 = vmul.f32 0.0078125, %v181_v26 }
 0x1be   :  { %v187_v29 = vmul.f32 %v185_v27, %v185_v27  ;;  %v190_v34 = vsub.f32 %v175_v13, %v185_v27 }
 0x1bf   :  { %v184_v28 = vpop.xlane.xlu0 %183 }
 0x1c0   :  { %v186_v30 = vmul.f32 0.0078125, %v184_v28 }
 0x1c2   :  { %v188_v31 = vsub.f32 %v186_v30, %v187_v29 }
 0x1c4   :  { %v189_v32 = vmax.f32 %v188_v31, 0.0 }
 0x1c6   :  { %v191_v33 = vadd.f32 1e-05, %v189_v32 }
 0x1c8   :  { %443 = vrsqrt.f32 %v191_v33 }
 0x1d2   :  { %v444_v35 = vpop.eup %443 }
 0x1d3   :  { %v193_v37 = vmul.f32 %v444_v35, %v190_v34 }
 0x1d5   :  { %v201_v39 = vmul.f32 %v350_v36, %v193_v37 }
 0x1d7   :  { %v209_v40 = vadd.f32 %v351_v38, %v201_v39 }
 0x1d9   :  { %v210_v41 = vmax.f32 %v209_v40, 0.0 }
 0x1db   :  { %v211_v42 = vpack.c.bf16 %v210_v41, %v210_v41 }
 0x1dd   :  { %416 = vmatmul.mubr.bf16.vlgmr.msra.gmra.mrb[0].mxu1 %v211_v42 }
 0x2b0   :  { %v317_v44 = vpop.f32.mrb[0].mxu1 }
 0x2b1   :  { %v318_v45 = vadd.f32 %v352_v43, %v317_v44  ;;  %v417_v46 = vpop.f32.mrb[1].mxu1 }
 0x2b2   :  { %v320_v47 = vpop.f32.mrb[2].mxu1 }
 0x2b3   :  { %v323_v48 = vadd.f32 %v318_v45, %v629_v9  ;;  %v418_v49 = vpop.f32.mrb[3].mxu1 }
 0x2b5   :  { %324 = vst [vmem:[#allocation8] sm:$0xff] %v323_v48 }
 0x2b6   :  { %522 = shalt.err (!%p519_p0)
}
 0x2b7   :  { %s523_s22 = scalar_lea.hbm %s665_s7, 128 }
 0x2b8   :  { %p524_p1 = scmp.ne.s32.totalorder %s665_s7, %s523_s22  ;;  %p527_p2 = scmp.lt.u32.totalorder %s523_s22, %s665_s7 }
 0x2ba   :  { %p529_p3 = pnand %p527_p2, %p524_p1 }
 0x2bc   :  { %532 = shalt.err (!%p529_p3)
}
 0x2bd   :  { %334 = dma.vmem_to_hbm [thread:$0]  %s332_s21, 128, %s665_s7, [#allocation4]  }
 0x2be   :  { %537 = dma.done.wait [#allocation4], 128  }
 0x2bf   :  { %538 = vsyncadd [#allocation4], 4294967168 }
 0x2c0   :  { %338 = vsyncpa [#allocation3], 1 }
 0x2c1   :  { %339 = vsyncpa [#allocation6], 1 }
 0x2c2   :  { %340 = vsyncpa [#allocation4], 1 }

// kernel: tpu_custom_call.1
= control target key start
LH: loop header
LB: loop body
LE: loop exit
PB: predicated region body
PF: predicated region fallthrough
CT: control target
= control target key end

     0   :  { %12 = vsyncpa [#allocation3], 0  ;;  %s658_s0 = inlined_call_operand.hbm [shape: f32[8,128], index: 0, kind: input, shape index: {}]   ;;  %s659_s1 = inlined_call_operand.hbm [shape: bf16[128,128], index: 1, kind: input, shape index: {}]   ;;  %s660_s2 = inlined_call_operand.vmem [shape: f32[1,128], index: 2, kind: input, shape index: {}]   ;;  %s661_s3 = inlined_call_operand.vmem [shape: f32[1,128], index: 3, kind: input, shape index: {}]   ;;  %s662_s4 = inlined_call_operand.vmem [shape: f32[1,128], index: 4, kind: input, shape index: {}]   ;;  %s663_s5 = inlined_call_operand.hbm [shape: bf16[128,128], index: 5, kind: input, shape index: {}]   ;;  %s664_s6 = inlined_call_operand.vmem [shape: f32[1,128], index: 6, kind: input, shape index: {}]   ;;  %s665_s7 = inlined_call_operand.hbm [shape: f32[8,128], index: 7, kind: output, shape index: {}]  }
   0x1   :  { %13 = vsyncpa [#allocation6], 0 }
   0x2   :  { %14 = vsyncpa [#allocation4], 0  ;;  %s539_s24 = smov [#allocation5]   ;;  %s445_s28 = scalar_lea.hbm %s659_s1, 1024 }
   0x3   :  { %s30_s25 = sshll.u32 %s539_s24, 4  ;;  %p446_p0 = scmp.ne.s32.totalorder %s659_s1, %s445_s28  ;;  %s31_s25 = int_to_ptr.vmem [resolvable:$true] %s30_s25 }
   0x4   :  { %p449_p1 = scmp.lt.u32.totalorder %s445_s28, %s659_s1 }
   0x6   :  { %p451_p2 = pnand %p449_p1, %p446_p0 }
   0x8   :  { %454 = shalt.err (!%p451_p2)
}
   0x9   :  { %s455_s10 = scalar_lea.vmem %s31_s25, 1024  ;;  %p460_p4 = scmp.lt.s32.totalorder %s31_s25, %s31_s25 }
   0xa   :  { %p456_p3 = scmp.ne.s32.totalorder %s31_s25, %s455_s10  ;;  %p461_p5 = scmp.lt.s32.totalorder %s455_s10, %s455_s10 }
   0xc   :  { %p462_p6 = por %p461_p5, %p460_p4 }
   0xe   :  { %p463_p7 = pnand %p462_p6, %p456_p3 }
  0x10   :  { %466 = shalt.err (!%p463_p7)
}
  0x11   :  { %s540_s11 = smov 64   ;;  %s541_s12 = smov 4  }
  0x12   :  { %36 = dma.hbm_to_vmem [thread:$0]  %s659_s1, 1024, %s31_s25, [#allocation6], %s540_s11, %s540_s11, %s541_s12  }
  0x13   :  { %s542_s15 = smov [#allocation2]   ;;  %s543_s17 = smov [#allocation7]  }
  0x14   :  { %s21_s16 = sshll.u32 %s542_s15, 4  ;;  %s48_s18 = sshll.u32 %s543_s17, 4  ;;  %s22_s16 = int_to_ptr.vmem [resolvable:$true] %s21_s16  ;;  %s49_s18 = int_to_ptr.vmem [resolvable:$true] %s48_s18 }
  0x15   :  { %s467_s21 = scalar_lea.hbm %s658_s0, 128 }
  0x16   :  { %p468_p8 = scmp.ne.s32.totalorder %s658_s0, %s467_s21  ;;  %p471_p9 = scmp.lt.u32.totalorder %s467_s21, %s658_s0 }
  0x18   :  { %p473_p10 = pnand %p471_p9, %p468_p8 }
  0x1a   :  { %476 = shalt.err (!%p473_p10)
}
  0x1b   :  { %s477_s1 = scalar_lea.vmem %s22_s16, 128  ;;  %p482_p12 = scmp.lt.s32.totalorder %s22_s16, %s22_s16 }
  0x1c   :  { %p478_p11 = scmp.ne.s32.totalorder %s22_s16, %s477_s1  ;;  %p483_p13 = scmp.lt.s32.totalorder %s477_s1, %s477_s1 }
  0x1e   :  { %p484_p0 = por %p483_p13, %p482_p12 }
  0x20   :  { %p485_p1 = pnand %p484_p0, %p478_p11 }
  0x22   :  { %488 = shalt.err (!%p485_p1)
}
  0x23   :  { %24 = dma.hbm_to_vmem [thread:$0]  %s658_s0, 128, %s22_s16, [#allocation3]  }
  0x24   :  { %s489_s30 = scalar_lea.hbm %s663_s5, 1024 }
  0x25   :  { %p490_p2 = scmp.ne.s32.totalorder %s663_s5, %s489_s30  ;;  %p493_p3 = scmp.lt.u32.totalorder %s489_s30, %s663_s5 }
  0x27   :  { %p495_p4 = pnand %p493_p3, %p490_p2 }
  0x29   :  { %498 = shalt.err (!%p495_p4)
}
  0x2a   :  { %s499_s14 = scalar_lea.vmem %s49_s18, 1024  ;;  %p504_p6 = scmp.lt.s32.totalorder %s49_s18, %s49_s18 }
  0x2b   :  { %p500_p5 = scmp.ne.s32.totalorder %s49_s18, %s499_s14  ;;  %p505_p7 = scmp.lt.s32.totalorder %s499_s14, %s499_s14 }
  0x2d   :  { %p506_p8 = por %p505_p7, %p504_p6 }
  0x2f   :  { %p507_p9 = pnand %p506_p8, %p500_p5 }
  0x31   :  { %510 = shalt.err (!%p507_p9)
}
  0x32   :  { %54 = dma.hbm_to_vmem [thread:$0]  %s663_s5, 1024, %s49_s18, [#allocation6], %s540_s11, %s540_s11, %s541_s12  }
  0x33   :  { %533 = dma.done.wait [#allocation3], 128  }
  0x34   :  { %534 = vsyncadd [#allocation3], 4294967168 }
  0x35   :  { %535 = dma.done.wait [#allocation6], 2048  }
  0x36   :  { %536 = vsyncadd [#allocation6], 4294965248  ;;  %v544_v0 = vmov 0.0   ;;  %vm545_vm0 = vmmov 0   ;;  %v427_v1 = vld [vmem:[#allocation5] sm:$0xff]   ;;  %v428_v2 = vld [vmem:[#allocation5 + $0x8] sm:$0xff]  }
  0x37   :  { %379 = vmatprep.subr.bf16.mxu0 %v544_v0  ;;  %395 = vmatprep.mubr.msk.bf16.mxu0 %vm545_vm0, %v544_v0  ;;  %v429_v3 = vld [vmem:[#allocation5 + $0x10] sm:$0xff]   ;;  %v430_v4 = vld [vmem:[#allocation5 + $0x18] sm:$0xff]   ;;  %v431_v5 = vld [vmem:[#allocation5 + $0x20] sm:$0xff]   ;;  %s546_s20 = smov [#allocation8]  }
  0x38   :  { %399 = vmatprep.subr.bf16.mxu1 %v544_v0  ;;  %415 = vmatprep.mubr.msk.bf16.mxu1 %vm545_vm0, %v544_v0  ;;  %v432_v6 = vld [vmem:[#allocation5 + $0x28] sm:$0xff]   ;;  %v433_v7 = vld [vmem:[#allocation5 + $0x30] sm:$0xff]   ;;  %v434_v8 = vld [vmem:[#allocation5 + $0x38] sm:$0xff]   ;;  %s331_s21 = sshll.u32 %s546_s20, 4  ;;  %s332_s21 = int_to_ptr.vmem [resolvable:$true] %s331_s21 }
  0x39   :  { %380 = vmatpush3.bf16.msra.mxu0 %v427_v1  ;;  %v629_v9 = vld [vmem:[#allocation2] sm:$0xff]  ;;  %v435_v18 = vld [vmem:[#allocation7] sm:$0xff]   ;;  %v436_v19 = vld [vmem:[#allocation7 + $0x8] sm:$0xff]   ;;  %p516_p11 = scmp.lt.s32.totalorder %s332_s21, %s332_s21 }
  0x3a   :  { %381 = vmatprep.subr.bf16.mxu0 %v544_v0  ;;  %v68_v10 = vpack.c.bf16 %v629_v9, %v629_v9  ;;  %v341_v11 = vld [vmem:[%s660_s2] ss:$0 sm:$0xff]  ;;  %400 = vmatpush3.bf16.msra.mxu1 %v435_v18  ;;  %v437_v20 = vld [vmem:[#allocation7 + $0x10] sm:$0xff]   ;;  %v439_v22 = vld [vmem:[#allocation7 + $0x20] sm:$0xff]  }
  0x3b   :  { %401 = vmatprep.subr.bf16.mxu1 %v544_v0  ;;  %v438_v21 = vld [vmem:[#allocation7 + $0x18] sm:$0xff]   ;;  %v440_v23 = vld [vmem:[#allocation7 + $0x28] sm:$0xff]   ;;  %v441_v24 = vld [vmem:[#allocation7 + $0x30] sm:$0xff]  }
  0x3c   :  { %v442_v25 = vld [vmem:[#allocation7 + $0x38] sm:$0xff]  }
  0x3d   :  { %382 = vmatpush3.bf16.msra.mxu0 %v428_v2  ;;  %v350_v36 = vld [vmem:[%s661_s3] ss:$0 sm:$0xff]  ;;  %s511_s3 = scalar_lea.vmem %s332_s21, 128 }
  0x3e   :  { %383 = vmatprep.subr.bf16.mxu0 %v544_v0  ;;  %402 = vmatpush3.bf16.msra.mxu1 %v436_v19  ;;  %v351_v38 = vld [vmem:[%s662_s4] ss:$0 sm:$0xff]  ;;  %p512_p10 = scmp.ne.s32.totalorder %s332_s21, %s511_s3  ;;  %p517_p12 = scmp.lt.s32.totalorder %s511_s3, %s511_s3 }
  0x3f   :  { %403 = vmatprep.subr.bf16.mxu1 %v544_v0  ;;  %v352_v43 = vld [vmem:[%s664_s6] ss:$0 sm:$0xff] }
  0x40   :  { %p518_p13 = por %p517_p12, %p516_p11 }
  0x41   :  { %384 = vmatpush3.bf16.msra.mxu0 %v429_v3 }
  0x42   :  { %385 = vmatprep.subr.bf16.mxu0 %v544_v0  ;;  %404 = vmatpush3.bf16.msra.mxu1 %v437_v20  ;;  %p519_p0 = pnand %p518_p13, %p512_p10 }
  0x43   :  { %405 = vmatprep.subr.bf16.mxu1 %v544_v0 }
  0x45   :  { %386 = vmatpush3.bf16.msra.mxu0 %v430_v4 }
  0x46   :  { %387 = vmatprep.subr.bf16.mxu0 %v544_v0  ;;  %406 = vmatpush3.bf16.msra.mxu1 %v438_v21 }
  0x47   :  { %407 = vmatprep.subr.bf16.mxu1 %v544_v0 }
  0x49   :  { %388 = vmatpush3.bf16.msra.mxu0 %v431_v5 }
  0x4a   :  { %389 = vmatprep.subr.bf16.mxu0 %v544_v0  ;;  %408 = vmatpush3.bf16.msra.mxu1 %v439_v22 }
  0x4b   :  { %409 = vmatprep.subr.bf16.mxu1 %v544_v0 }
  0x4d   :  { %390 = vmatpush3.bf16.msra.mxu0 %v432_v6 }
  0x4e   :  { %391 = vmatprep.subr.bf16.mxu0 %v544_v0  ;;  %410 = vmatpush3.bf16.msra.mxu1 %v440_v23 }
  0x4f   :  { %411 = vmatprep.subr.bf16.mxu1 %v544_v0 }
  0x51   :  { %392 = vmatpush3.bf16.msra.mxu0 %v433_v7 }
  0x52   :  { %393 = vmatprep.subr.bf16.mxu0 %v544_v0  ;;  %412 = vmatpush3.bf16.msra.mxu1 %v441_v24 }
  0x53   :  { %413 = vmatprep.subr.bf16.mxu1 %v544_v0 }
  0x55   :  { %394 = vmatpush3.bf16.msra.mxu0 %v434_v8 }
  0x56   :  { %414 = vmatpush3.bf16.msra.mxu1 %v442_v25 }
  0x58   :  { %396 = vmatmul.mubr.bf16.vlgmr.msra.gmra.mrb[0].mxu0 %v68_v10 }
 0x12b   :  { %v174_v12 = vpop.f32.mrb[0].mxu0 }
 0x12c   :  { %v175_v13 = vadd.f32 %v341_v11, %v174_v12  ;;  %v397_v14 = vpop.f32.mrb[1].mxu0 }
 0x12d   :  { %v177_v15 = vpop.f32.mrb[2].mxu0 }
 0x12e   :  { %180 = vadd.xlane.f32.xlu0 %v175_v13  ;;  %v398_v16 = vpop.f32.mrb[3].mxu0  ;;  %v182_v17 = vmul.f32 %v175_v13, %v175_v13 }
 0x132   :  { %183 = vadd.xlane.f32.xlu0 %v182_v17 }
 0x1bb   :  { %v181_v26 = vpop.xlane.xlu0 %180 }
 0x1bc   :  { %v185_v27 = vmul.f32 0.0078125, %v181_v26 }
 0x1be   :  { %v187_v29 = vmul.f32 %v185_v27, %v185_v27  ;;  %v190_v34 = vsub.f32 %v175_v13, %v185_v27 }
 0x1bf   :  { %v184_v28 = vpop.xlane.xlu0 %183 }
 0x1c0   :  { %v186_v30 = vmul.f32 0.0078125, %v184_v28 }
 0x1c2   :  { %v188_v31 = vsub.f32 %v186_v30, %v187_v29 }
 0x1c4   :  { %v189_v32 = vmax.f32 %v188_v31, 0.0 }
 0x1c6   :  { %v191_v33 = vadd.f32 1e-05, %v189_v32 }
 0x1c8   :  { %443 = vrsqrt.f32 %v191_v33 }
 0x1d2   :  { %v444_v35 = vpop.eup %443 }
 0x1d3   :  { %v193_v37 = vmul.f32 %v444_v35, %v190_v34 }
 0x1d5   :  { %v201_v39 = vmul.f32 %v350_v36, %v193_v37 }
 0x1d7   :  { %v209_v40 = vadd.f32 %v351_v38, %v201_v39 }
 0x1d9   :  { %v210_v41 = vmax.f32 %v209_v40, 0.0 }
 0x1db   :  { %v211_v42 = vpack.c.bf16 %v210_v41, %v210_v41 }
 0x1dd   :  { %416 = vmatmul.mubr.bf16.vlgmr.msra.gmra.mrb[0].mxu1 %v211_v42 }
 0x2b0   :  { %v317_v44 = vpop.f32.mrb[0].mxu1 }
 0x2b1   :  { %v318_v45 = vadd.f32 %v352_v43, %v317_v44  ;;  %v417_v46 = vpop.f32.mrb[1].mxu1 }
 0x2b2   :  { %v320_v47 = vpop.f32.mrb[2].mxu1 }
 0x2b3   :  { %v323_v48 = vadd.f32 %v318_v45, %v629_v9  ;;  %v418_v49 = vpop.f32.mrb[3].mxu1 }
 0x2b5   :  { %324 = vst [vmem:[#allocation8] sm:$0xff] %v323_v48 }
 0x2b6   :  { %522 = shalt.err (!%p519_p0)
}
 0x2b7   :  { %s523_s22 = scalar_lea.hbm %s665_s7, 128 }
 0x2b8   :  { %p524_p1 = scmp.ne.s32.totalorder %s665_s7, %s523_s22  ;;  %p527_p2 = scmp.lt.u32.totalorder %s523_s22, %s665_s7 }
 0x2ba   :  { %p529_p3 = pnand %p527_p2, %p524_p1 }
 0x2bc   :  { %532 = shalt.err (!%p529_p3)
}
 0x2bd   :  { %334 = dma.vmem_to_hbm [thread:$0]  %s332_s21, 128, %s665_s7, [#allocation4]  }
 0x2be   :  { %537 = dma.done.wait [#allocation4], 128  }
 0x2bf   :  { %538 = vsyncadd [#allocation4], 4294967168 }
 0x2c0   :  { %338 = vsyncpa [#allocation3], 1 }
 0x2c1   :  { %339 = vsyncpa [#allocation6], 1 }
 0x2c2   :  { %340 = vsyncpa [#allocation4], 1 }

</bundles_post_ra>
